<compile_context>
chip_gen: v7x
topology: tpu7x:2x2x1
jax: 0.10.0
libtpu: 0.0.40
codegen_flags: <defaults>
</compile_context>

<pallas_src>
import jax
import jax.numpy as jnp
from jax.experimental import pallas as pl
from jax.experimental.pallas import tpu as pltpu


def _round_up(x, m):
    return ((x + m - 1) // m) * m


def _attention_gate_kernel(g_ref, x_ref, wg_ref, wx_ref, b1_ref, wpsi_ref,
                           bpsi_ref, out_ref):
    # g_ref    : (1, F_g, tm)   spatial tile, channels on sublanes, pixels on lanes
    # x_ref    : (1, F_l, tm)
    # wg_ref   : (F_int, F_g)   BN-folded
    # wx_ref   : (F_int, F_l)   BN-folded
    # b1_ref   : (F_int, 1)     combined folded bias (bg + bx)
    # bpsi_ref : (1,) in SMEM   BN-folded scalar psi bias
    # wpsi_ref : (1, F_int)     BN-folded
    # out_ref  : (1, F_l, tm)
    g_t = g_ref[0]                                       # (F_g, tm)
    x_t = x_ref[0]                                       # (F_l, tm)
    a = jnp.dot(wg_ref[...], g_t, preferred_element_type=jnp.float32)
    a = a + jnp.dot(wx_ref[...], x_t, preferred_element_type=jnp.float32)
    a = jnp.maximum(a + b1_ref[...], 0.0)                # ReLU, (F_int, tm)
    p = jnp.dot(wpsi_ref[...], a,
                preferred_element_type=jnp.float32) + bpsi_ref[0]
    psi = jax.nn.sigmoid(p)                              # (1, tm)
    out_ref[0] = (x_t.astype(jnp.float32) * psi).astype(out_ref.dtype)


def _fold_bn(w, b, gamma, beta, mean, var, eps=1e-5):
    """Fold eval-mode BatchNorm into a pointwise (1x1) conv.

    w: (C_out, C_in), b: (C_out,).  Returns folded (w, b)."""
    scale = gamma / jnp.sqrt(var + eps)                  # (C_out,)
    w_f = w * scale[:, None]
    b_f = (b - mean) * scale + beta
    return w_f, b_f


def attention_gate(g, x, params, *, tm=4096):
    """g, x: NCHW float32 arrays of shape (N, F_g, H, W) / (N, F_l, H, W)."""
    N, F_g, H, W = g.shape
    _, F_l, _, _ = x.shape
    F_int = params["wg"].shape[0]
    HW = H * W

    wg, bg = _fold_bn(params["wg"], params["bg"], params["bn_g_gamma"],
                      params["bn_g_beta"], params["bn_g_mean"], params["bn_g_var"])
    wx, bx = _fold_bn(params["wx"], params["bx"], params["bn_x_gamma"],
                      params["bn_x_beta"], params["bn_x_mean"], params["bn_x_var"])
    wpsi, bpsi = _fold_bn(params["wpsi"], params["bpsi"], params["bn_p_gamma"],
                          params["bn_p_beta"], params["bn_p_mean"], params["bn_p_var"])

    # Combined first-stage bias (g1 + x1 share a single bias add).
    b1 = (bg + bx).reshape(F_int, 1)

    # (N, C, H, W) -> (N, C, H*W): pure reshape, no transpose / HBM shuffle.
    g3 = g.reshape(N, F_g, HW)
    x3 = x.reshape(N, F_l, HW)

    # Spatial tile: as large as possible (big mem-bound tiles) while padding at
    # most to the next multiple of 128 lanes for small images.
    tm_eff = min(_round_up(tm, 128), _round_up(HW, 128))
    HWp = _round_up(HW, tm_eff)
    if HWp != HW:
        pad = HWp - HW
        g3 = jnp.pad(g3, ((0, 0), (0, 0), (0, pad)))
        x3 = jnp.pad(x3, ((0, 0), (0, 0), (0, pad)))

    grid = (N, HWp // tm_eff)

    out3 = pl.pallas_call(
        _attention_gate_kernel,
        out_shape=jax.ShapeDtypeStruct((N, F_l, HWp), x.dtype),
        grid=grid,
        in_specs=[
            pl.BlockSpec((1, F_g, tm_eff), lambda n, t: (n, 0, t)),   # g tile
            pl.BlockSpec((1, F_l, tm_eff), lambda n, t: (n, 0, t)),   # x tile
            pl.BlockSpec((F_int, F_g), lambda n, t: (0, 0)),          # Wg
            pl.BlockSpec((F_int, F_l), lambda n, t: (0, 0)),          # Wx
            pl.BlockSpec((F_int, 1), lambda n, t: (0, 0)),            # bg + bx
            pl.BlockSpec((1, F_int), lambda n, t: (0, 0)),            # Wpsi
            pl.BlockSpec(memory_space=pltpu.MemorySpace.SMEM),        # bpsi (scalar)
        ],
        out_specs=pl.BlockSpec((1, F_l, tm_eff), lambda n, t: (n, 0, t)),
        compiler_params=pltpu.CompilerParams(
            dimension_semantics=("parallel", "parallel")),
    )(g3, x3, wg, wx, b1, wpsi, bpsi)

    if HWp != HW:
        out3 = out3[:, :, :HW]
    return out3.reshape(N, F_l, H, W)


def _reference(g, x, params):
    """Pure-JAX reference (same eval-mode BN folding), straight on NCHW."""
    wg, bg = _fold_bn(params["wg"], params["bg"], params["bn_g_gamma"],
                      params["bn_g_beta"], params["bn_g_mean"], params["bn_g_var"])
    wx, bx = _fold_bn(params["wx"], params["bx"], params["bn_x_gamma"],
                      params["bn_x_beta"], params["bn_x_mean"], params["bn_x_var"])
    wpsi, bpsi = _fold_bn(params["wpsi"], params["bpsi"], params["bn_p_gamma"],
                          params["bn_p_beta"], params["bn_p_mean"], params["bn_p_var"])
    g1 = jnp.einsum("oc,nchw->nohw", wg, g) + bg[None, :, None, None]
    x1 = jnp.einsum("oc,nchw->nohw", wx, x) + bx[None, :, None, None]
    a = jnp.maximum(g1 + x1, 0.0)
    p = jnp.einsum("oc,nchw->nohw", wpsi, a) + bpsi[None, :, None, None]
    psi = jax.nn.sigmoid(p)
    return x * psi


def _make_params(key, F_g, F_l, F_int):
    ks = jax.random.split(key, 6)
    p = {
        # 1x1 conv weights stored as (C_out, C_in); PyTorch stores (C_out, C_in, 1, 1).
        "wg": 0.1 * jax.random.normal(ks[0], (F_int, F_g), jnp.float32),
        "bg": 0.1 * jax.random.normal(ks[1], (F_int,), jnp.float32),
        "wx": 0.1 * jax.random.normal(ks[2], (F_int, F_l), jnp.float32),
        "bx": 0.1 * jax.random.normal(ks[3], (F_int,), jnp.float32),
        "wpsi": 0.1 * jax.random.normal(ks[4], (1, F_int), jnp.float32),
        "bpsi": 0.1 * jax.random.normal(ks[5], (1,), jnp.float32),
        # BN params (eval mode): non-trivial running stats / affine to exercise folding.
        "bn_g_gamma": jnp.linspace(0.8, 1.2, F_int, dtype=jnp.float32),
        "bn_g_beta": jnp.linspace(-0.1, 0.1, F_int, dtype=jnp.float32),
        "bn_g_mean": jnp.linspace(-0.05, 0.05, F_int, dtype=jnp.float32),
        "bn_g_var": jnp.linspace(0.9, 1.1, F_int, dtype=jnp.float32),
        "bn_x_gamma": jnp.linspace(1.1, 0.9, F_int, dtype=jnp.float32),
        "bn_x_beta": jnp.linspace(0.05, -0.05, F_int, dtype=jnp.float32),
        "bn_x_mean": jnp.linspace(0.02, -0.02, F_int, dtype=jnp.float32),
        "bn_x_var": jnp.linspace(1.05, 0.95, F_int, dtype=jnp.float32),
        "bn_p_gamma": jnp.ones((1,), jnp.float32) * 1.05,
        "bn_p_beta": jnp.ones((1,), jnp.float32) * 0.02,
        "bn_p_mean": jnp.ones((1,), jnp.float32) * 0.01,
        "bn_p_var": jnp.ones((1,), jnp.float32) * 0.98,
    }
    return p


if __name__ == "__main__":
    # Small shapes consistent with the module: batch=2, F_g=F_l=4, F_int=8, 16x16 spatial.
    N, F_g, F_l, F_int, H, W = 2, 4, 4, 8, 16, 16
    key = jax.random.PRNGKey(0)
    kg, kx, kp = jax.random.split(key, 3)
    g = jax.random.normal(kg, (N, F_g, H, W), jnp.float32)
    x = jax.random.normal(kx, (N, F_l, H, W), jnp.float32)
    params = _make_params(kp, F_g, F_l, F_int)

    out = attention_gate(g, x, params)
    out = jax.block_until_ready(out)

    ref = jax.block_until_ready(_reference(g, x, params))
    assert out.shape == (N, F_l, H, W)
    err = float(jnp.max(jnp.abs(out - ref)))
    if err > 1e-4:
        raise AssertionError(f"mismatch vs reference: max abs err {err}")
    print("KERNEL_OK")
</pallas_src>

<mosaic_0001>
module attributes {stable_mosaic.version = 11 : i64} {
  func.func @_attention_gate_kernel(%arg0: i32, %arg1: i32, %arg2: memref<1x4x256xf32, #tpu.memory_space<vmem>>, %arg3: memref<1x4x256xf32, #tpu.memory_space<vmem>>, %arg4: memref<8x4xf32, #tpu.memory_space<vmem>>, %arg5: memref<8x4xf32, #tpu.memory_space<vmem>>, %arg6: memref<8x1xf32, #tpu.memory_space<vmem>>, %arg7: memref<1x8xf32, #tpu.memory_space<vmem>>, %arg8: memref<1xf32, #tpu.memory_space<smem>>, %arg9: memref<1x4x256xf32, #tpu.memory_space<vmem>>) attributes {dimension_semantics = [#tpu.dimension_semantics<parallel>, #tpu.dimension_semantics<parallel>], iteration_bounds = array<i64: 2, 1>, scalar_prefetch = 0 : i64, scratch_operands = 0 : i64, tpu.core_type = #tpu.core_type<tc>, window_params = [{transform_indices = @transform_0, window_bounds = array<i64: 1, 4, 256>}, {transform_indices = @transform_1, window_bounds = array<i64: 1, 4, 256>}, {pipeline_mode = #tpu.pipeline_mode<synchronous>, transform_indices = @transform_2, window_bounds = array<i64: 8, 4>}, {pipeline_mode = #tpu.pipeline_mode<synchronous>, transform_indices = @transform_3, window_bounds = array<i64: 8, 4>}, {pipeline_mode = #tpu.pipeline_mode<synchronous>, transform_indices = @transform_4, window_bounds = array<i64: 8, 1>}, {pipeline_mode = #tpu.pipeline_mode<synchronous>, transform_indices = @transform_5, window_bounds = array<i64: 1, 8>}, {transform_indices = @transform_6, window_bounds = array<i64: 1>}, {transform_indices = @transform_7, window_bounds = array<i64: 1, 4, 256>}]} {
    %c0 = arith.constant 0 : index
    %c0_0 = arith.constant 0 : index
    %c0_1 = arith.constant 0 : index
    %0 = vector.load %arg2[%c0, %c0_0, %c0_1] : memref<1x4x256xf32, #tpu.memory_space<vmem>>, vector<1x4x256xf32>
    %1 = vector.shape_cast %0 : vector<1x4x256xf32> to vector<4x256xf32>
    %c0_2 = arith.constant 0 : index
    %c0_3 = arith.constant 0 : index
    %c0_4 = arith.constant 0 : index
    %2 = vector.load %arg3[%c0_2, %c0_3, %c0_4] : memref<1x4x256xf32, #tpu.memory_space<vmem>>, vector<1x4x256xf32>
    %3 = vector.shape_cast %2 : vector<1x4x256xf32> to vector<4x256xf32>
    %c0_5 = arith.constant 0 : index
    %c0_6 = arith.constant 0 : index
    %4 = vector.load %arg4[%c0_5, %c0_6] : memref<8x4xf32, #tpu.memory_space<vmem>>, vector<8x4xf32>
    %cst = arith.constant dense<0.000000e+00> : vector<8x256xf32>
    %5 = tpu.matmul %4, %1, %cst {dimension_numbers = #tpu.dot_dimension_numbers<[1], [0], [0], [1], [0, 0, 1, 1], [], []>} : vector<8x4xf32>, vector<4x256xf32>, vector<8x256xf32> -> vector<8x256xf32>
    %c0_7 = arith.constant 0 : index
    %c0_8 = arith.constant 0 : index
    %6 = vector.load %arg5[%c0_7, %c0_8] : memref<8x4xf32, #tpu.memory_space<vmem>>, vector<8x4xf32>
    %cst_9 = arith.constant dense<0.000000e+00> : vector<8x256xf32>
    %7 = tpu.matmul %6, %3, %cst_9 {dimension_numbers = #tpu.dot_dimension_numbers<[1], [0], [0], [1], [0, 0, 1, 1], [], []>} : vector<8x4xf32>, vector<4x256xf32>, vector<8x256xf32> -> vector<8x256xf32>
    %8 = arith.addf %5, %7 : vector<8x256xf32>
    %c0_10 = arith.constant 0 : index
    %c0_11 = arith.constant 0 : index
    %9 = vector.load %arg6[%c0_10, %c0_11] : memref<8x1xf32, #tpu.memory_space<vmem>>, vector<8x1xf32>
    %10 = vector.broadcast %9 : vector<8x1xf32> to vector<8x256xf32>
    %11 = arith.addf %8, %10 : vector<8x256xf32>
    %cst_12 = arith.constant 0.000000e+00 : f32
    %12 = vector.broadcast %cst_12 : f32 to vector<8x256xf32>
    %13 = arith.maximumf %11, %12 : vector<8x256xf32>
    %c0_13 = arith.constant 0 : index
    %c0_14 = arith.constant 0 : index
    %14 = vector.load %arg7[%c0_13, %c0_14] : memref<1x8xf32, #tpu.memory_space<vmem>>, vector<1x8xf32>
    %cst_15 = arith.constant dense<0.000000e+00> : vector<1x256xf32>
    %15 = tpu.matmul %14, %13, %cst_15 {dimension_numbers = #tpu.dot_dimension_numbers<[1], [0], [0], [1], [0, 0, 1, 1], [], []>} : vector<1x8xf32>, vector<8x256xf32>, vector<1x256xf32> -> vector<1x256xf32>
    %c0_16 = arith.constant 0 : index
    %16 = memref.load %arg8[%c0_16] : memref<1xf32, #tpu.memory_space<smem>>
    %17 = vector.broadcast %16 : f32 to vector<1x256xf32>
    %18 = arith.addf %15, %17 : vector<1x256xf32>
    %19 = arith.negf %18 : vector<1x256xf32>
    %20 = math.exp %19 : vector<1x256xf32>
    %cst_17 = arith.constant 1.000000e+00 : f32
    %21 = vector.broadcast %cst_17 : f32 to vector<1x256xf32>
    %22 = arith.addf %21, %20 : vector<1x256xf32>
    %23 = arith.divf %21, %22 : vector<1x256xf32>
    %24 = vector.broadcast %23 : vector<1x256xf32> to vector<4x256xf32>
    %25 = arith.mulf %3, %24 : vector<4x256xf32>
    %c0_18 = arith.constant 0 : index
    %c0_19 = arith.constant 0 : index
    %c0_20 = arith.constant 0 : index
    %26 = vector.load %arg9[%c0_18, %c0_19, %c0_20] : memref<1x4x256xf32, #tpu.memory_space<vmem>>, vector<1x4x256xf32>
    %27 = vector.shape_cast %26 : vector<1x4x256xf32> to vector<4x256xf32>
    %28 = vector.shape_cast %25 : vector<4x256xf32> to vector<1x4x256xf32>
    tpu.vector_store %arg9[%c0_18, %c0_19, %c0_20], %28 {strides = array<i32>} : memref<1x4x256xf32, #tpu.memory_space<vmem>>, vector<1x4x256xf32>,
    return
  }
  func.func @transform_0(%arg0: i32, %arg1: i32) -> (i32, i32, i32) {
    %c0_i32 = arith.constant 0 : i32
    %c0_i32_0 = arith.constant 0 : i32
    return %arg0, %c0_i32, %arg1 : i32, i32, i32
  }
  func.func @transform_1(%arg0: i32, %arg1: i32) -> (i32, i32, i32) {
    %c0_i32 = arith.constant 0 : i32
    %c0_i32_0 = arith.constant 0 : i32
    return %arg0, %c0_i32, %arg1 : i32, i32, i32
  }
  func.func @transform_2(%arg0: i32, %arg1: i32) -> (i32, i32) {
    %c0_i32 = arith.constant 0 : i32
    %c0_i32_0 = arith.constant 0 : i32
    %c0_i32_1 = arith.constant 0 : i32
    return %c0_i32, %c0_i32_0 : i32, i32
  }
  func.func @transform_3(%arg0: i32, %arg1: i32) -> (i32, i32) {
    %c0_i32 = arith.constant 0 : i32
    %c0_i32_0 = arith.constant 0 : i32
    %c0_i32_1 = arith.constant 0 : i32
    return %c0_i32, %c0_i32_0 : i32, i32
  }
  func.func @transform_4(%arg0: i32, %arg1: i32) -> (i32, i32) {
    %c0_i32 = arith.constant 0 : i32
    %c0_i32_0 = arith.constant 0 : i32
    %c0_i32_1 = arith.constant 0 : i32
    return %c0_i32, %c0_i32_0 : i32, i32
  }
  func.func @transform_5(%arg0: i32, %arg1: i32) -> (i32, i32) {
    %c0_i32 = arith.constant 0 : i32
    %c0_i32_0 = arith.constant 0 : i32
    %c0_i32_1 = arith.constant 0 : i32
    return %c0_i32, %c0_i32_0 : i32, i32
  }
  func.func @transform_6(%arg0: i32, %arg1: i32) -> i32 {
    %c0_i32 = arith.constant 0 : i32
    %c0_i32_0 = arith.constant 0 : i32
    return %c0_i32 : i32
  }
  func.func @transform_7(%arg0: i32, %arg1: i32) -> (i32, i32, i32) {
    %c0_i32 = arith.constant 0 : i32
    %c0_i32_0 = arith.constant 0 : i32
    return %arg0, %c0_i32, %arg1 : i32, i32, i32
  }
}

</mosaic_0001>

<bundles_post_ra>
// kernel: tpu_custom_call.1
= control target key start
LH: loop header
LB: loop body
LE: loop exit
PB: predicated region body
PF: predicated region fallthrough
CT: control target
= control target key end

     0   :  { %s1086_s0 = inlined_call_operand.vmem [shape: f32[2,4,256], index: 0, kind: input, shape index: {}]   ;;  %s1087_s1 = inlined_call_operand.vmem [shape: f32[2,4,256], index: 1, kind: input, shape index: {}]   ;;  %s1088_s2 = inlined_call_operand.vmem [shape: f32[8,4], index: 2, kind: input, shape index: {}]   ;;  %s1089_s3 = inlined_call_operand.vmem [shape: f32[8,4], index: 3, kind: input, shape index: {}]   ;;  %s1090_s4 = inlined_call_operand.vmem [shape: f32[8,1], index: 4, kind: input, shape index: {}]   ;;  %s1091_s5 = inlined_call_operand.vmem [shape: f32[1,8], index: 5, kind: input, shape index: {}]   ;;  %s1092_s6 = inlined_call_operand.<no memory space> [shape: f32[1], index: 6, kind: input, shape index: {}]   ;;  %s1093_s7 = inlined_call_operand.hbm [shape: f32[2,4,256], index: 7, kind: output, shape index: {}]  }
   0x1   :  { %12 = sst [smem:[#allocation2]] %s1092_s6 }
   0x2   :  { %13 = vsyncpa [#allocation4], 0 }
   0x3   :  { %15 = vsyncpa [#allocation4 + $0x1], 0  ;;  %s959_s26 = smov 0   ;;  %s961_s27 = smov 0  }
   0x4   :  { %s963_s28 = smov 0   ;;  %s965_s29 = smov 0  }
   0x5   :  { %s967_s30 = smov 0   ;;  %s969_s8 = smov 0  }
   0x6 LB: > { %s736_s6 = sadd.s32 4294967295, %s911_s8   ;;  %s737_s9 = sadd.s32 4294967294, %s911_s8   ;;  %s911_s8 = sphi %s969_s8, %s21_s8   ;;  %s907_s30 = sphi %s967_s30, %s1100_s30   ;;  %s903_s29 = sphi %s965_s29, %s1099_s29   ;;  %s899_s28 = sphi %s963_s28, %s1098_s28   ;;  %s895_s27 = sphi %s961_s27, %s1097_s27   ;;  %s891_s26 = sphi %s959_s26, %s1096_s26  }
   0x7   : > { %s33_s10 = sadd.s32 1, %s907_s30  ;;  %s203_s11 = sadd.s32 1, %s899_s28 }
   0x8   : > { %p35_p0 = scmp.ge.s32.totalorder %s33_s10, 2  ;;  %p213_p1 = scmp.ne.s32.totalorder %s899_s28, %s895_s27 }
   0x9   : > { %p214_p2 = scmp.eq.s32.totalorder %s736_s6, 1  ;;  %p219_p3 = scmp.ne.s32.totalorder %s895_s27, %s891_s26 }
   0xa   : > { %s1102_s10 = smov (%p35_p0, %s33_s10), 0  ;;  %p220_p5 = scmp.eq.s32.totalorder %s737_s9, 1 }
   0xb   : > { %p999_p4 = por %p214_p2, %p213_p1  ;;  %s198_s13 = ssub.s32 %s907_s30, %s1102_s10 }
   0xc   : > { %p740_p6 = scmp.ge.s32.totalorder %s911_s8, 1  ;;  %p201_p7 = scmp.eq.s32.totalorder %s198_s13, 0 }
   0xd   : > { %p1006_p8 = por %p220_p5, %p219_p3  ;;  %p279_p9 = scmp.lt.s32.totalorder %s911_s8, 3 }
   0xe   : > { %s1012_s15 = scalar_select %p201_p7, %s899_s28, %s203_s11  }
   0xf   : > { %p280_p10 = pnand %p740_p6, %p279_p9 }
  0x10   : > { %p325_p11 = scmp.lt.s32.totalorder (!%p280_p10), %s903_s29, 1  ;;  %v913_v0 = vmov (!%p280_p10), 0.0   ;;  %v511_v1 = vld [vmem:[%s1090_s4] sm:$0xff] (!%p280_p10)  ;;  %v914_v2 = vmov (!%p280_p10), 0   ;;  %vm355_vm0 = vcmask (!%p280_p10), 1043456   ;;  %vm351_vm1 = vcmask (!%p280_p10), 31744  }
  0x11   : > { %283 = sbr.rel (%p280_p10) target bundleno = 522 (0x20a), region = 48  ;;  %424 = vmatprep.mubr.f32.mxu0 (!%p280_p10), %v913_v0  ;;  %592 = vmatprep.mubr.f32.mxu1 (!%p280_p10), %v913_v0  ;;  %v348_v7 = vld [vmem:[%s1089_s3] sm:$0xff] (!%p280_p10)  ;;  %vm524_vm2 = vcmask (!%p280_p10), 64512   ;;  %v611_v28 = vlaneseq (!%p280_p10)  ;;  %s762_s21 = sshll.u32 (!%p280_p10), %s903_s29, 7 }
  0x12   : > { %822 = vset.pattern.permute.xlu0 (!%p280_p10), %v914_v2  ;;  %v347_v8 = vld [vmem:[%s1088_s2] sm:$0xff] (!%p280_p10)  ;;  %s1039_s6 = scalar_lea.hbm (!%p280_p10), %s1093_s7, %s762_s21 }
  0x13   : > { %514 = vperm.xlu0 (!%p280_p10), %822, %v511_v1   ;;  %v521_v16 = vld [vmem:[%s1091_s5] sm:$0x1] (!%p280_p10)  ;;  %v612_v29 = vshrl.u32 (!%p280_p10), %v611_v28, 7 }
  0x15   : > { %v613_v30 = vsub.s32 (!%p280_p10), 0, %v612_v29 }
  0x18   : > { %s326_s18 = scalar_select %p325_p11, %s903_s29, 1 }
  0x19   : > { %s915_s29 = smov [#allocation3]  }
  0x1a   : > { %s760_s19 = sshll.u32 %s326_s18, 3  ;;  %s522_s18 = sld [smem:[#allocation2]] }
  0x1b   : > { %s332_s22 = scalar_lea.vmem %s1086_s0, %s760_s19  ;;  %s342_s25 = scalar_lea.vmem %s1087_s1, %s760_s19 }
  0x1c   : > { %v345_v3 = vld [vmem:[%s332_s22] sm:$0xff]  ;;  %s321_s19 = sand.u32 1, %s895_s27   ;;  %s837_s13 = sshll.u32 %s915_s29, 4  ;;  %s838_s13 = int_to_ptr.vmem [resolvable:$false] %s837_s13 }
  0x1d   : > { %v346_v4 = vld [vmem:[%s342_s25] sm:$0xff]  ;;  %v432_v6 = vcombine.high %v345_v3, %v345_v3  ;;  %s741_s20 = sshll.u32 %s321_s19, 3  ;;  %s626_s9 = scalar_lea.sflag [#allocation4], %s321_s19 }
  0x1e   : > { %v350_v5 = vcombine.high %v346_v4, %v346_v4  ;;  %s323_s22 = scalar_lea.vmem [#allocation3], %s741_s20  ;;  %s839_s16 = scalar_lea.vmem %s838_s13, 256 }
  0x1f   : > { %s642_s23 = sshll.u32 %s323_s22, 4  ;;  %s1041_s23 = int_to_ptr.vmem [resolvable:$true] %s642_s23 }
  0x20   : > { %746 = vmatprep.subr.msk.mxu0 %vm355_vm0, %v350_v5  ;;  %v523_v17 = vstv %s522_s18  ;;  %s833_s11 = scalar_lea.vmem %s1041_s23, 128  ;;  %p840_p1 = scmp.lt.s32.totalorder %s1041_s23, %s838_s13 }
  0x21   : > { %747 = vmatpush1.msk.msra.mxu0 %vm355_vm0, %v346_v4  ;;  %p834_p12 = scmp.ne.s32.totalorder %s1041_s23, %s833_s11  ;;  %p841_p2 = scmp.lt.s32.totalorder %s839_s16, %s833_s11 }
  0x22   : > { %748 = vmatmul.mubr.msk.f32.vlgmr.msra.gmra.mrb[0].mxu0 %vm351_vm1, %v348_v7  ;;  %749 = vmatprep.subr.msk.mxu0 %vm355_vm0, %v432_v6 }
  0x23   : > { %750 = vmatpush1.msk.msra.mxu0 %vm355_vm0, %v345_v3  ;;  %504 = vmatprep.mubr.f32.mxu0 %v913_v0  ;;  %p835_p13 = pnand %p834_p12, %p999_p4  ;;  %p842_p3 = por %p841_p2, %p840_p1 }
  0x25   : > { %p836_p0 = pneg %p835_p13 }
  0x27   : > { %p843_p5 = pnand %p842_p3, %p836_p0 }
  0x2a   : > { %751 = vmatmul.mubr.msk.f32.vlgmr.msra.gmra.mrb[0].mxu0 %vm351_vm1, %v347_v8 }
  0x92   : > { %v515_v9 = vpop.permute.xlu0 %514 }
  0xfd   : > { %v506_v10 = vpop.f32.mrb[0].mxu0 }
  0xfe   : > { %v517_v11 = vadd.f32 %v515_v9, %v506_v10  ;;  %v508_v12 = vpop.f32.mrb[1].mxu0 }
  0xff   : > { %v518_v13 = vadd.f32 %v515_v9, %v508_v12 }
 0x100   : > { %v519_v15 = vmax.f32 %v517_v11, 0.0 }
 0x101   : > { %v520_v14 = vmax.f32 %v518_v13, 0.0 }
 0x103   : > { %528 = vmatprep.subr.mxu1 %v520_v14 }
 0x104   : > { %529 = vmatpush1.msra.mxu1 %v519_v15 }
 0x105   : > { %752 = vmatmul.mubr.msk.f32.vlgmr.msra.gmra.mrb[0].mxu1 %vm524_vm2, %v521_v16 }
 0x1d8   : > { %v594_v18 = vpop.f32.mrb[0].mxu1 }
 0x1d9   : > { %v595_v19 = vadd.f32 %v594_v18, %v523_v17  ;;  %v596_v20 = vpop.f32.mrb[1].mxu1 }
 0x1da   : > { %v597_v21 = vadd.f32 %v596_v20, %v523_v17 }
 0x1db   : > { %v753_v22 = vmul.f32 -1.442695, %v595_v19 }
 0x1dc   : > { %v754_v23 = vmul.f32 -1.442695, %v597_v21 }
 0x1dd   : > { %825 = vpow2.f32 %v753_v22 }
 0x1de   : > { %827 = vpow2.f32 %v754_v23 }
 0x1e7   : > { %v826_v24 = vpop.eup %825 }
 0x1e8   : > { %v828_v25 = vpop.eup %827  ;;  %v605_v26 = vadd.f32 1.0, %v826_v24 }
 0x1e9   : > { %v606_v27 = vadd.f32 1.0, %v828_v25 }
 0x1ea   : > { %829 = vrcp.f32 %v605_v26 }
 0x1eb   : > { %831 = vrcp.f32 %v606_v27 }
 0x1f4   : > { %v830_v31 = vpop.eup %829 }
 0x1f5   : > { %v832_v32 = vpop.eup %831  ;;  %v614_v33 = vrot.slane %v830_v31, %v613_v30 }
 0x1f6   : > { %v618_v34 = vrot.slane %v832_v32, %v613_v30 }
 0x1f8   : > { %v621_v35 = vcombine.low %v614_v33, %v618_v34 }
 0x1fa   : > { %v623_v36 = vmul.f32 %v621_v35, %v346_v4 }
 0x1fc   : > { %624 = vst [vmem:[%s323_s22] sm:$0xff] %v623_v36 }
 0x1fd   : > { %846 = shalt.err (!%p843_p5)
}
 0x1fe   : > { %s847_s17 = scalar_lea.hbm %s1039_s6, 128  ;;  %s851_s20 = scalar_lea.hbm %s1093_s7, 256 }
 0x1ff   : > { %p848_p6 = scmp.ne.s32.totalorder %s1039_s6, %s847_s17  ;;  %p852_p10 = scmp.lt.u32.totalorder %s1039_s6, %s1093_s7 }
 0x200   : > { %p853_p11 = scmp.lt.u32.totalorder %s851_s20, %s847_s17  ;;  %p855_p13 = scmp.lt.u32.totalorder %s847_s17, %s1039_s6 }
 0x201   : > { %p849_p7 = pnand %p848_p6, %p999_p4 }
 0x202   : > { %p854_p12 = por %p853_p11, %p852_p10 }
 0x203   : > { %p850_p9 = pneg %p849_p7 }
 0x204   : > { %p856_p0 = por %p855_p13, %p854_p12 }
 0x206   : > { %p857_p1 = pnand %p856_p0, %p850_p9 }
 0x208   : > { %860 = shalt.err (!%p857_p1)
}
 0x209   : > { %765 = dma.vmem_to_hbm [thread:$0]  (%p999_p4), %s1041_s23, 128, %s1039_s6, %s626_s9  }
 0x20a PF: > { %p771_p2 = scmp.ge.s32.totalorder %s911_s8, 2  ;;  %s654_s24 = sand.u32 1, %s891_s26  }
 0x20b   : > { %s655_s25 = scalar_lea.sflag [#allocation4], %s654_s24 }
 0x20c   : > { %p768_p3 = pnand %p771_p2, %p1006_p8 }
 0x20e   : > { %886 = dma.done.wait (!%p768_p3), %s655_s25, 128  }
 0x20f   : > { %888 = vsyncadd (!%p768_p3), %s655_s25, 4294967168  ;;  %s21_s8 = sadd.s32 1, %s911_s8   ;;  %s1096_s26 = smov %s895_s27 }
 0x210   : > { %p18_p5 = scmp.ge.s32.totalorder %s21_s8, 4   ;;  %s1097_s27 = smov %s899_s28 }
 0x211   : > { %s1098_s28 = smov %s1012_s15  ;;  %s1099_s29 = smov %s907_s30 }
 0x212   : > { %s1100_s30 = smov %s1102_s10  ;;  %20 = sbr.rel (!%p18_p5) target bundleno = 6 (0x6), region = 86 }
 0x219   :  { %660 = vsyncpa [#allocation4], 1 }
 0x21a   :  { %662 = vsyncpa [#allocation4 + $0x1], 1 }

</bundles_post_ra>
